<compile_context>
chip_gen: v7x
topology: tpu7x:2x2x1
jax: 0.10.0
libtpu: 0.0.40
codegen_flags: <defaults>
</compile_context>

<pallas_src>
import functools

import jax
import jax.numpy as jnp
from jax.experimental import pallas as pl
from jax.experimental.pallas import tpu as pltpu


def _round_up(x: int, m: int) -> int:
    return pl.cdiv(x, m) * m


def _even_tiles(n: int, align: int, tile_max: int):
    """Split n (padded to `align`) into equal tiles <= tile_max, minimizing padding."""
    n_al = _round_up(n, align)
    nt = pl.cdiv(n_al, tile_max)
    t = _round_up(pl.cdiv(n_al, nt), align)
    return t, t * nt, nt


# ---------------------------------------------------------------------------
# Fused kernel:  encoder matmul (K-accumulated)  ->  L2 normalize  ->  logits
# ---------------------------------------------------------------------------
def _clip_fused_kernel(x_ref, w_ref, b_ref, t_ref, logits_ref, imgn_ref, acc_ref):
    k = pl.program_id(1)

    @pl.when(k == 0)
    def _():
        acc_ref[...] = jnp.zeros_like(acc_ref)

    # bf16 x bf16 -> f32 accumulate on the MXU.
    acc_ref[...] += jnp.dot(x_ref[...], w_ref[...],
                            preferred_element_type=jnp.float32)

    @pl.when(k == pl.num_programs(1) - 1)
    def _():
        # Epilogue: bias (added once, not per K-step), normalize, logits.
        f = acc_ref[...] + b_ref[...]                                     # [TM, D] f32
        inv = jax.lax.rsqrt(jnp.sum(f * f, axis=-1, keepdims=True) + 1e-12)
        f_n = f * inv                                                     # [TM, D]
        imgn_ref[...] = f_n.astype(imgn_ref.dtype)
        # logit_scale == 1.0 in the original module, so no extra scaling.
        logits_ref[...] = jnp.dot(f_n.astype(t_ref.dtype), t_ref[...],
                                  preferred_element_type=jnp.float32)


@functools.partial(jax.jit, static_argnames=("tm_max", "tk_max"))
def clip_forward(x_flat, w, b, t_dc, *, tm_max=128, tk_max=512):
    """x_flat: [B, F] bf16, w: [F, D] bf16, b: [1, D] f32, t_dc: [D, C_pad] bf16."""
    B, F = x_flat.shape
    Fw, D = w.shape
    _, Cp = t_dc.shape

    # Even tiling with minimal zero-padding on both the batch (M) and feature (K) axes.
    tm, Bp, _ = _even_tiles(B, 8, tm_max)
    tk, Fp, _ = _even_tiles(F, 128, tk_max)

    if Bp != B or Fp != F:
        x_flat = jnp.pad(x_flat, ((0, Bp - B), (0, Fp - F)))
    if Fp != Fw:
        w = jnp.pad(w, ((0, Fp - Fw), (0, 0)))

    grid = (Bp // tm, Fp // tk)  # reduction (K) axis last

    logits, imgn = pl.pallas_call(
        _clip_fused_kernel,
        out_shape=(
            jax.ShapeDtypeStruct((Bp, Cp), jnp.float32),
            jax.ShapeDtypeStruct((Bp, D), jnp.float32),
        ),
        grid_spec=pltpu.PrefetchScalarGridSpec(
            num_scalar_prefetch=0,
            grid=grid,
            in_specs=[
                pl.BlockSpec((tm, tk), lambda i, k: (i, k)),   # x tile
                pl.BlockSpec((tk, D), lambda i, k: (k, 0)),    # w tile
                pl.BlockSpec((1, D), lambda i, k: (0, 0)),     # bias (resident, fetched once)
                pl.BlockSpec((D, Cp), lambda i, k: (0, 0)),    # text feats (resident)
            ],
            out_specs=(
                pl.BlockSpec((tm, Cp), lambda i, k: (i, 0)),   # logits (lane-dense C)
                pl.BlockSpec((tm, D), lambda i, k: (i, 0)),    # normalized image feats
            ),
            scratch_shapes=[pltpu.VMEM((tm, D), jnp.float32)],
        ),
        compiler_params=pltpu.CompilerParams(
            dimension_semantics=("parallel", "arbitrary")),
    )(x_flat, w, b, t_dc)

    return logits[:B], imgn[:B]


# ---------------------------------------------------------------------------
# CustomCLIP wrapper
# ---------------------------------------------------------------------------
class CustomCLIPJax:
    def __init__(self, key, *, num_classes, embed_dim, img_shape):
        # img_shape = (C, H, W)
        C, H, W = img_shape
        feat_in = C * H * W
        k1, k2, k3 = jax.random.split(key, 3)

        # TODO(synk): real clip_model.encode_image is a full ViT/ResNet tower; it is
        # replaced by a single deterministic linear projection stand-in (bf16 weights).
        self.enc_w = (jax.random.normal(k1, (feat_in, embed_dim), jnp.float32)
                      / jnp.sqrt(feat_in)).astype(jnp.bfloat16)
        self.enc_b = jax.random.normal(k2, (1, embed_dim), jnp.float32) * 0.01

        # TODO(synk): real text features come from clip_model.encode_text(prompts);
        # stood in by random features, L2-normalized once (as in __init__).
        tf = jax.random.normal(k3, (num_classes, embed_dim), jnp.float32)
        tf = tf / jnp.linalg.norm(tf, axis=-1, keepdims=True)
        self.text_features = tf                                  # returned, [C, D] f32

        # Kernel-side copy: pre-transposed to [D, C_pad], zero-padded to a multiple of
        # 128 classes (lane-dense logits output), bf16 for the MXU.
        c_pad = _round_up(num_classes, 128)
        t_dc = jnp.zeros((embed_dim, c_pad), jnp.float32).at[:, :num_classes].set(tf.T)
        self.text_dc = t_dc.astype(jnp.bfloat16)

        self.num_classes = num_classes
        self.embed_dim = embed_dim

    def __call__(self, image, label=None):
        # image: [B, C, H, W] (NCHW, like PyTorch); flatten + bf16 cast is plain-JAX
        # glue (halves the x DMA traffic into the kernel vs. loading f32).
        B = image.shape[0]
        x_flat = image.reshape(B, -1).astype(jnp.bfloat16)
        logits_pad, image_features_norm = clip_forward(
            x_flat, self.enc_w, self.enc_b, self.text_dc)
        logits = logits_pad[:, :self.num_classes]
        return logits, image_features_norm, self.text_features


if __name__ == "__main__":
    key = jax.random.PRNGKey(0)
    k_img, k_model = jax.random.split(key)

    B, C, H, W = 2, 3, 16, 16
    num_classes, embed_dim = 10, 256

    image = jax.random.normal(k_img, (B, C, H, W), jnp.float32)

    model = CustomCLIPJax(k_model, num_classes=num_classes,
                          embed_dim=embed_dim, img_shape=(C, H, W))

    logits, img_feats, txt_feats = model(image)
    jax.block_until_ready((logits, img_feats, txt_feats))

    # ---- sanity checks against a plain-JAX reference with matching dtypes ----
    x_flat = image.reshape(B, -1).astype(jnp.bfloat16)
    feats_ref = jnp.dot(x_flat, model.enc_w,
                        preferred_element_type=jnp.float32) + model.enc_b
    inv_ref = jax.lax.rsqrt(jnp.sum(feats_ref * feats_ref, axis=-1, keepdims=True) + 1e-12)
    feats_ref_n = feats_ref * inv_ref
    logits_ref = jnp.dot(feats_ref_n.astype(jnp.bfloat16), model.text_dc,
                         preferred_element_type=jnp.float32)[:, :num_classes]

    assert logits.shape == (B, num_classes)
    assert img_feats.shape == (B, embed_dim)
    assert txt_feats.shape == (num_classes, embed_dim)
    assert jnp.allclose(logits, logits_ref, atol=2e-2, rtol=2e-2)
    assert jnp.allclose(img_feats, feats_ref_n, atol=2e-2, rtol=2e-2)
    # returned text features are unit-norm, as in the original __init__
    assert jnp.allclose(jnp.linalg.norm(txt_feats, axis=-1), 1.0, atol=1e-5)

    print("KERNEL_OK")
</pallas_src>

<mosaic_0001>
module attributes {stable_mosaic.version = 11 : i64} {
  func.func @_clip_fused_kernel(%arg0: i32, %arg1: i32, %arg2: memref<8x384xbf16, #tpu.memory_space<vmem>>, %arg3: memref<384x256xbf16, #tpu.memory_space<vmem>>, %arg4: memref<1x256xf32, #tpu.memory_space<vmem>>, %arg5: memref<256x128xbf16, #tpu.memory_space<vmem>>, %arg6: memref<8x128xf32, #tpu.memory_space<vmem>>, %arg7: memref<8x256xf32, #tpu.memory_space<vmem>>, %arg8: memref<8x256xf32, #tpu.memory_space<vmem>>) attributes {dimension_semantics = [#tpu.dimension_semantics<parallel>, #tpu.dimension_semantics<arbitrary>], iteration_bounds = array<i64: 1, 2>, scalar_prefetch = 0 : i64, scratch_operands = 1 : i64, tpu.core_type = #tpu.core_type<tc>, window_params = [{transform_indices = @transform_0, window_bounds = array<i64: 8, 384>}, {transform_indices = @transform_1, window_bounds = array<i64: 384, 256>}, {pipeline_mode = #tpu.pipeline_mode<synchronous>, transform_indices = @transform_2, window_bounds = array<i64: 1, 256>}, {pipeline_mode = #tpu.pipeline_mode<synchronous>, transform_indices = @transform_3, window_bounds = array<i64: 256, 128>}, {transform_indices = @transform_4, window_bounds = array<i64: 8, 128>}, {transform_indices = @transform_5, window_bounds = array<i64: 8, 256>}]} {
    %c0_i32 = arith.constant 0 : i32
    %0 = arith.cmpi eq, %arg1, %c0_i32 : i32
    %1 = arith.extui %0 : i1 to i32
    %c0_i32_0 = arith.constant 0 : i32
    %2 = arith.cmpi ne, %1, %c0_i32_0 : i32
    scf.if %2 {
      %cst_9 = arith.constant 0.000000e+00 : f32
      %12 = vector.broadcast %cst_9 : f32 to vector<8x256xf32>
      %c0_10 = arith.constant 0 : index
      %c0_11 = arith.constant 0 : index
      %13 = vector.load %arg8[%c0_10, %c0_11] : memref<8x256xf32, #tpu.memory_space<vmem>>, vector<8x256xf32>
      tpu.vector_store %arg8[%c0_10, %c0_11], %12 {strides = array<i32>} : memref<8x256xf32, #tpu.memory_space<vmem>>, vector<8x256xf32>,
    } else {
    }
    %c0 = arith.constant 0 : index
    %c0_1 = arith.constant 0 : index
    %3 = vector.load %arg8[%c0, %c0_1] : memref<8x256xf32, #tpu.memory_space<vmem>>, vector<8x256xf32>
    %c0_2 = arith.constant 0 : index
    %c0_3 = arith.constant 0 : index
    %4 = vector.load %arg2[%c0_2, %c0_3] : memref<8x384xbf16, #tpu.memory_space<vmem>>, vector<8x384xbf16>
    %c0_4 = arith.constant 0 : index
    %c0_5 = arith.constant 0 : index
    %5 = vector.load %arg3[%c0_4, %c0_5] : memref<384x256xbf16, #tpu.memory_space<vmem>>, vector<384x256xbf16>
    %cst = arith.constant dense<0.000000e+00> : vector<8x256xf32>
    %6 = tpu.matmul %4, %5, %cst {dimension_numbers = #tpu.dot_dimension_numbers<[1], [0], [0], [1], [0, 0, 1, 1], [], []>} : vector<8x384xbf16>, vector<384x256xbf16>, vector<8x256xf32> -> vector<8x256xf32>
    %7 = arith.addf %3, %6 : vector<8x256xf32>
    %c0_6 = arith.constant 0 : index
    %c0_7 = arith.constant 0 : index
    %8 = vector.load %arg8[%c0_6, %c0_7] : memref<8x256xf32, #tpu.memory_space<vmem>>, vector<8x256xf32>
    tpu.vector_store %arg8[%c0_6, %c0_7], %7 {strides = array<i32>} : memref<8x256xf32, #tpu.memory_space<vmem>>, vector<8x256xf32>,
    %c1_i32 = arith.constant 1 : i32
    %9 = arith.cmpi eq, %arg1, %c1_i32 : i32
    %10 = arith.extui %9 : i1 to i32
    %c0_i32_8 = arith.constant 0 : i32
    %11 = arith.cmpi ne, %10, %c0_i32_8 : i32
    scf.if %11 {
      %c0_9 = arith.constant 0 : index
      %c0_10 = arith.constant 0 : index
      %12 = vector.load %arg8[%c0_9, %c0_10] : memref<8x256xf32, #tpu.memory_space<vmem>>, vector<8x256xf32>
      %c0_11 = arith.constant 0 : index
      %c0_12 = arith.constant 0 : index
      %13 = vector.load %arg4[%c0_11, %c0_12] : memref<1x256xf32, #tpu.memory_space<vmem>>, vector<1x256xf32>
      %14 = vector.broadcast %13 : vector<1x256xf32> to vector<8x256xf32>
      %15 = arith.addf %12, %14 : vector<8x256xf32>
      %16 = arith.mulf %15, %15 : vector<8x256xf32>
      %cst_13 = arith.constant dense<0.000000e+00> : vector<8xf32>
      %17 = vector.multi_reduction <add>, %16, %cst_13 [1] : vector<8x256xf32> to vector<8xf32>
      %18 = vector.shape_cast %17 : vector<8xf32> to vector<8x1xf32>
      %cst_14 = arith.constant 9.99999996E-13 : f32
      %19 = vector.broadcast %cst_14 : f32 to vector<8x1xf32>
      %20 = arith.addf %18, %19 : vector<8x1xf32>
      %21 = math.rsqrt %20 : vector<8x1xf32>
      %22 = vector.broadcast %21 : vector<8x1xf32> to vector<8x256xf32>
      %23 = arith.mulf %15, %22 : vector<8x256xf32>
      %c0_15 = arith.constant 0 : index
      %c0_16 = arith.constant 0 : index
      %24 = vector.load %arg7[%c0_15, %c0_16] : memref<8x256xf32, #tpu.memory_space<vmem>>, vector<8x256xf32>
      tpu.vector_store %arg7[%c0_15, %c0_16], %23 {strides = array<i32>} : memref<8x256xf32, #tpu.memory_space<vmem>>, vector<8x256xf32>,
      %25 = arith.truncf %23 : vector<8x256xf32> to vector<8x256xbf16>
      %c0_17 = arith.constant 0 : index
      %c0_18 = arith.constant 0 : index
      %26 = vector.load %arg5[%c0_17, %c0_18] : memref<256x128xbf16, #tpu.memory_space<vmem>>, vector<256x128xbf16>
      %cst_19 = arith.constant dense<0.000000e+00> : vector<8x128xf32>
      %27 = tpu.matmul %25, %26, %cst_19 {dimension_numbers = #tpu.dot_dimension_numbers<[1], [0], [0], [1], [0, 0, 1, 1], [], []>} : vector<8x256xbf16>, vector<256x128xbf16>, vector<8x128xf32> -> vector<8x128xf32>
      %c0_20 = arith.constant 0 : index
      %c0_21 = arith.constant 0 : index
      %28 = vector.load %arg6[%c0_20, %c0_21] : memref<8x128xf32, #tpu.memory_space<vmem>>, vector<8x128xf32>
      tpu.vector_store %arg6[%c0_20, %c0_21], %27 {strides = array<i32>} : memref<8x128xf32, #tpu.memory_space<vmem>>, vector<8x128xf32>,
    } else {
    }
    return
  }
  func.func @transform_0(%arg0: i32, %arg1: i32) -> (i32, i32) {
    %c0_i32 = arith.constant 0 : i32
    return %arg0, %arg1 : i32, i32
  }
  func.func @transform_1(%arg0: i32, %arg1: i32) -> (i32, i32) {
    %c0_i32 = arith.constant 0 : i32
    %c0_i32_0 = arith.constant 0 : i32
    return %arg1, %c0_i32 : i32, i32
  }
  func.func @transform_2(%arg0: i32, %arg1: i32) -> (i32, i32) {
    %c0_i32 = arith.constant 0 : i32
    %c0_i32_0 = arith.constant 0 : i32
    %c0_i32_1 = arith.constant 0 : i32
    return %c0_i32, %c0_i32_0 : i32, i32
  }
  func.func @transform_3(%arg0: i32, %arg1: i32) -> (i32, i32) {
    %c0_i32 = arith.constant 0 : i32
    %c0_i32_0 = arith.constant 0 : i32
    %c0_i32_1 = arith.constant 0 : i32
    return %c0_i32, %c0_i32_0 : i32, i32
  }
  func.func @transform_4(%arg0: i32, %arg1: i32) -> (i32, i32) {
    %c0_i32 = arith.constant 0 : i32
    %c0_i32_0 = arith.constant 0 : i32
    return %arg0, %c0_i32 : i32, i32
  }
  func.func @transform_5(%arg0: i32, %arg1: i32) -> (i32, i32) {
    %c0_i32 = arith.constant 0 : i32
    %c0_i32_0 = arith.constant 0 : i32
    return %arg0, %c0_i32 : i32, i32
  }
}

</mosaic_0001>

<bundles_post_ra>
// kernel: clip_forward.1
= control target key start
LH: loop header
LB: loop body
LE: loop exit
PB: predicated region body
PF: predicated region fallthrough
CT: control target
= control target key end

     0   :  { %11 = vsyncpa [#allocation4], 0  ;;  %s1698_s0 = inlined_call_operand.vmem [shape: bf16[8,768], index: 0, kind: input, shape index: {}]   ;;  %s1699_s1 = inlined_call_operand.hbm [shape: bf16[768,256], index: 1, kind: input, shape index: {}]   ;;  %s1700_s2 = inlined_call_operand.vmem [shape: f32[1,256], index: 2, kind: input, shape index: {}]   ;;  %s1701_s3 = inlined_call_operand.hbm [shape: bf16[256,128], index: 3, kind: input, shape index: {}]   ;;  %s1702_s4 = inlined_call_operand.vmem [shape: f32[8,128], index: 4, kind: output, shape index: {0}]   ;;  %s1703_s5 = inlined_call_operand.vmem [shape: f32[8,256], index: 5, kind: output, shape index: {1}]  }
   0x1   :  { %13 = vsyncpa [#allocation4 + $0x1], 0 }
   0x2   :  { %14 = vsyncpa [#allocation6], 0  ;;  %s1473_s18 = smov 0   ;;  %s1475_s19 = smov 0  }
   0x3   :  { %s1477_s20 = smov 0   ;;  %s1479_s21 = smov 0  }
   0x4   :  { %s1481_s22 = smov 0   ;;  %s1483_s23 = smov 0  }
   0x5 LB: > { %s1047_s24 = sadd.s32 4294967295, %s1433_s23   ;;  %p80_p0 = scmp.ne.s32.totalorder %s1417_s19, %s1413_s18  ;;  %s1433_s23 = sphi %s1483_s23, %s20_s23   ;;  %s1429_s22 = sphi %s1481_s22, %s1720_s22   ;;  %s1425_s21 = sphi %s1479_s21, %s1719_s21   ;;  %s1421_s20 = sphi %s1477_s20, %s1718_s20   ;;  %s1417_s19 = sphi %s1475_s19, %s1717_s19   ;;  %s1413_s18 = sphi %s1473_s18, %s1716_s18  }
   0x6   : > { %p1503_p1 = scmp.eq.s32.totalorder %s1047_s24, 0  ;;  %p1048_p2 = scmp.ge.s32.totalorder %s1433_s23, 1 }
   0x7   : > { %p185_p3 = scmp.lt.s32.totalorder %s1433_s23, 3  ;;  %s1435_s28 = smov [#allocation5]  }
   0x8   : > { %s1708_s25 = scalar_select %p1503_p1, 1, 0 }
   0x9   : > { %p1511_p4 = por %p1503_p1, %p80_p0  ;;  %p1515_p5 = pnand %p1048_p2, %p185_p3 }
   0xa   : > { %s200_s29 = sshll.u32 %s1435_s28, 4  ;;  %s29_s6 = sadd.s32 1, %s1429_s22  ;;  %s201_s29 = int_to_ptr.vmem [resolvable:$true] %s200_s29 }
   0xb   : > { %s1709_s26 = scalar_select %p1511_p4, 1, 0 }
   0xc   : > { %s1710_s27 = scalar_select %p1515_p5, 1, 0 }
   0xd   : > { %p1162_p6 = pneg %p1515_p5  ;;  %s1321_s9 = scalar_lea.hbm %s1701_s3, 2048 }
   0xe   : > { %p1322_p8 = scmp.ne.s32.totalorder %s1701_s3, %s1321_s9  ;;  %p1328_p12 = scmp.lt.u32.totalorder %s1321_s9, %s1701_s3 }
   0xf   : > { %p1523_p7 = pnand %p1162_p6, %p1503_p1 }
  0x11   : > { %p1323_p9 = pneg %p1523_p7 }
  0x13   : > { %p1324_p10 = pnand %p1323_p9, %p1322_p8 }
  0x15   : > { %p1325_p11 = pneg %p1324_p10 }
  0x17   : > { %p1330_p13 = pnand %p1328_p12, %p1325_p11 }
  0x19   : > { %1333 = shalt.err (!%p1330_p13)
}
  0x1a   : > { %s1334_s14 = scalar_lea.vmem %s201_s29, 2048  ;;  %p1342_p6 = scmp.lt.s32.totalorder %s201_s29, %s201_s29 }
  0x1b   : > { %p1335_p0 = scmp.ne.s32.totalorder %s201_s29, %s1334_s14  ;;  %p1343_p1 = scmp.lt.s32.totalorder %s1334_s14, %s1334_s14 }
  0x1d   : > { %p1337_p2 = pnand %p1335_p0, %p1323_p9  ;;  %p1344_p4 = por %p1343_p1, %p1342_p6 }
  0x1f   : > { %p1338_p3 = pneg %p1337_p2 }
  0x21   : > { %p1345_p5 = pnand %p1344_p4, %p1338_p3 }
  0x23   : > { %1348 = shalt.err (!%p1345_p5)
}
  0x24   : > { %s1436_s15 = smov 64   ;;  %s1437_s16 = smov 4  }
  0x25   : > { %1165 = dma.hbm_to_vmem [thread:$0]  (!%p1523_p7), %s1701_s3, 2048, %s201_s29, [#allocation6], %s1436_s15, %s1436_s15, %s1437_s16  }
  0x26   : > { %p30_p1 = scmp.ge.s32.totalorder %s29_s6, 2  ;;  %s67_s24 = sadd.s32 1, %s1421_s20 }
  0x27   : > { %p74_p4 = scmp.ne.s32.totalorder %s1421_s20, %s1417_s19  ;;  %p75_p5 = scmp.eq.s32.totalorder %s1433_s23, 0 }
  0x28   : > { %s1722_s6 = smov (%p30_p1, %s29_s6), 0  ;;  %p1171_p9 = scmp.lt.s32.totalorder %s1433_s23, 2 }
  0x29   : > { %p76_p8 = por %p75_p5, %p74_p4  ;;  %s64_s28 = ssub.s32 %s1429_s22, %s1722_s6 }
  0x2a   : > { %s227_s7 = sand.u32 1, %s1421_s20   ;;  %p65_p10 = scmp.eq.s32.totalorder %s64_s28, 0 }
  0x2b   : > { %s1154_s8 = smul.u32 384, %s227_s7  ;;  %p1554_p11 = pnand %p1171_p9, %p76_p8 }
  0x2c   : > { %s1559_s29 = scalar_select %p65_p10, %s1421_s20, %s67_s24  }
  0x2d   : > { %s1131_s30 = smul.u32 6144, %s1429_s22  ;;  %s231_s10 = scalar_lea.vmem [#allocation3], %s1154_s8 }
  0x2e   : > { %s239_s11 = sshll.u32 %s231_s10, 4  ;;  %s1569_s15 = scalar_lea.sflag [#allocation4], %s227_s7  ;;  %s1567_s11 = int_to_ptr.vmem [resolvable:$true] %s239_s11 }
  0x2f   : > { %s1565_s14 = scalar_lea.hbm %s1699_s1, %s1131_s30  ;;  %p1351_p12 = pneg %p1554_p11 }
  0x30   : > { %s1349_s16 = scalar_lea.hbm %s1565_s14, 6144  ;;  %s1354_s24 = scalar_lea.hbm %s1699_s1, 12288 }
  0x31   : > { %p1350_p7 = scmp.ne.s32.totalorder %s1565_s14, %s1349_s16  ;;  %p1355_p2 = scmp.lt.u32.totalorder %s1565_s14, %s1699_s1 }
  0x32   : > { %p1356_p3 = scmp.lt.u32.totalorder %s1354_s24, %s1349_s16  ;;  %p1358_p1 = scmp.lt.u32.totalorder %s1349_s16, %s1565_s14 }
  0x33   : > { %p1352_p13 = pnand %p1351_p12, %p1350_p7 }
  0x34   : > { %p1357_p6 = por %p1356_p3, %p1355_p2 }
  0x35   : > { %p1353_p0 = pneg %p1352_p13 }
  0x36   : > { %p1359_p4 = por %p1358_p1, %p1357_p6 }
  0x38   : > { %p1360_p5 = pnand %p1359_p4, %p1353_p0 }
  0x3a   : > { %1363 = shalt.err (!%p1360_p5)
}
  0x3b   : > { %s1364_s7 = scalar_lea.vmem %s1567_s11, 6144  ;;  %s1438_s30 = smov [#allocation3]  }
  0x3c   : > { %p1365_p8 = scmp.ne.s32.totalorder %s1567_s11, %s1364_s7  ;;  %s1369_s10 = sshll.u32 %s1438_s30, 4  ;;  %s1370_s10 = int_to_ptr.vmem [resolvable:$false] %s1369_s10 }
  0x3d   : > { %s1371_s12 = scalar_lea.vmem %s1370_s10, 12288  ;;  %p1372_p7 = scmp.lt.s32.totalorder %s1567_s11, %s1370_s10 }
  0x3e   : > { %p1367_p9 = pnand %p1365_p8, %p1351_p12  ;;  %p1373_p13 = scmp.lt.s32.totalorder %s1371_s12, %s1364_s7 }
  0x40   : > { %p1368_p10 = pneg %p1367_p9  ;;  %p1374_p2 = por %p1373_p13, %p1372_p7 }
  0x42   : > { %p1375_p3 = pnand %p1374_p2, %p1368_p10 }
  0x44   : > { %1378 = shalt.err (!%p1375_p3)
}
  0x45   : > { %s1439_s13 = smov 128   ;;  %s1440_s16 = smov 8  }
  0x46   : > { %1169 = dma.hbm_to_vmem [thread:$0]  (!%p1554_p11), %s1565_s14, 6144, %s1567_s11, %s1569_s15, %s1439_s13, %s1439_s13, %s1440_s16  }
  0x47   : > { %p1713_p12 = scmp.ne.s32.totalorder %s1710_s27, 0 }
  0x48   : > { %s253_s17 = sand.u32 (!%p1713_p12), 1, %s1417_s19   ;;  %p1714_p0 = scmp.ne.s32.totalorder (!%p1713_p12), %s1709_s26, 0 }
  0x49   : > { %251 = sbr.rel (%p1713_p12) target bundleno = 765 (0x2fd), region = 36  ;;  %s254_s24 = scalar_lea.sflag (!%p1713_p12), [#allocation4], %s253_s17 }
  0x4a   : > { %s1155_s18 = smul.u32 (!%p1713_p12), 384, %s253_s17 }
  0x4c   : > { %s1600_s28 = scalar_lea.vmem (!%p1713_p12), [#allocation3], %s1155_s18 }
  0x50   : > { %1404 = dma.done.wait (%p1714_p0), %s254_s24, 6144  }
  0x51   : > { %1406 = vsyncadd (%p1714_p0), %s254_s24, 4294961152  ;;  %p1715_p6 = scmp.ne.s32.totalorder %s1708_s25, 0 }
  0x53   : > { %1408 = dma.done.wait (%p1715_p6), [#allocation6], 2048  }
  0x54   : > { %1410 = vsyncadd (%p1715_p6), [#allocation6], 4294965248  ;;  %s301_s27 = smul.u32 3, %s1425_s21  ;;  %p1056_p1 = scmp.ne.s32.totalorder %s1425_s21, 0 }
  0x55   : > { %v1441_v0 = vmov (!%p1056_p1), 0.0  }
  0x56   : > { %p304_p11 = scmp.lt.s32.totalorder %s301_s27, 5  ;;  %325 = sbr.rel (%p1056_p1) target bundleno = 93 (0x5d), region = 48  ;;  %326 = vst [vmem:[#allocation2] sm:$0xff] (!%p1056_p1), %v1441_v0  ;;  %327 = vst [vmem:[#allocation2 + $0x8] sm:$0xff] (!%p1056_p1), %v1441_v0 }
  0x58   : > { %s1724_s27 = smov (!%p304_p11, %s301_s27), 5 }
  0x59   : > { %s1055_s9 = sshll.u32 %s1724_s27, 2 }
  0x5a   : > { %s1614_s15 = scalar_lea.vmem %s1698_s0, %s1055_s9 }
  0x5d PF: > { %v1228_v1 = vld [vmem:[%s1600_s28 + $0x4] ss:$8 sps:$4 sm:$0xff]   ;;  %v1230_v2 = vld [vmem:[%s1600_s28] ss:$8 sps:$4 sm:$0xff]   ;;  %v1442_v3 = vmov 0   ;;  %v330_v34 = vld [vmem:[%s1614_s15] sm:$0xff] }
  0x5e   : > { %704 = vmatprep.mubr.bf16.mxu1 %v1442_v3  ;;  %631 = vmatprep.subr.bf16.mxu0 %v1228_v1  ;;  %v1231_v4 = vld [vmem:[%s1600_s28 + $0x14] ss:$8 sps:$4 sm:$0xff]   ;;  %v1233_v5 = vld [vmem:[%s1600_s28 + $0x10] ss:$8 sps:$4 sm:$0xff]   ;;  %v1234_v6 = vld [vmem:[%s1600_s28 + $0x24] ss:$8 sps:$4 sm:$0xff]   ;;  %v1058_v35 = vcombine.high %v330_v34, %v330_v34  ;;  %v1057_v53 = vcombine.low %v330_v34, %v330_v34 }
  0x5f   : > { %632 = vmatpush1.bf16.msra.mxu0 %v1230_v2  ;;  %v1236_v7 = vld [vmem:[%s1600_s28 + $0x20] ss:$8 sps:$4 sm:$0xff]   ;;  %v1237_v8 = vld [vmem:[%s1600_s28 + $0x34] ss:$8 sps:$4 sm:$0xff]   ;;  %v1239_v9 = vld [vmem:[%s1600_s28 + $0x30] ss:$8 sps:$4 sm:$0xff]  }
  0x60   : > { %633 = vmatprep.subr.bf16.mxu0 %v1231_v4  ;;  %v1252_v10 = vld [vmem:[%s1600_s28 + $0x104] ss:$8 sps:$4 sm:$0xff]   ;;  %v1254_v11 = vld [vmem:[%s1600_s28 + $0x100] ss:$8 sps:$4 sm:$0xff]   ;;  %v1258_v13 = vld [vmem:[%s1600_s28 + $0x114] ss:$8 sps:$4 sm:$0xff]   ;;  %663 = vmatprep.mubr.bf16.mxu0 %v1058_v35 }
  0x61   : > { %v1240_v12 = vld [vmem:[%s1600_s28 + $0x44] ss:$8 sps:$4 sm:$0xff]   ;;  %672 = vmatprep.subr.bf16.mxu1 %v1252_v10  ;;  %v1260_v14 = vld [vmem:[%s1600_s28 + $0x110] ss:$8 sps:$4 sm:$0xff]   ;;  %v1242_v15 = vld [vmem:[%s1600_s28 + $0x40] ss:$8 sps:$4 sm:$0xff]  }
  0x62   : > { %673 = vmatpush1.bf16.msra.mxu1 %v1254_v11  ;;  %v1243_v16 = vld [vmem:[%s1600_s28 + $0x54] ss:$8 sps:$4 sm:$0xff]   ;;  %v1264_v17 = vld [vmem:[%s1600_s28 + $0x124] ss:$8 sps:$4 sm:$0xff]   ;;  %v1266_v18 = vld [vmem:[%s1600_s28 + $0x120] ss:$8 sps:$4 sm:$0xff]  }
  0x63   : > { %634 = vmatpush1.bf16.msra.mxu0 %v1233_v5  ;;  %674 = vmatprep.subr.bf16.mxu1 %v1258_v13  ;;  %v1245_v19 = vld [vmem:[%s1600_s28 + $0x50] ss:$8 sps:$4 sm:$0xff]   ;;  %v1270_v20 = vld [vmem:[%s1600_s28 + $0x134] ss:$8 sps:$4 sm:$0xff]   ;;  %v1246_v21 = vld [vmem:[%s1600_s28 + $0x64] ss:$8 sps:$4 sm:$0xff]  }
  0x64   : > { %635 = vmatprep.subr.bf16.mxu0 %v1234_v6  ;;  %v1272_v22 = vld [vmem:[%s1600_s28 + $0x130] ss:$8 sps:$4 sm:$0xff]   ;;  %v1248_v23 = vld [vmem:[%s1600_s28 + $0x60] ss:$8 sps:$4 sm:$0xff]   ;;  %v1276_v24 = vld [vmem:[%s1600_s28 + $0x144] ss:$8 sps:$4 sm:$0xff]  }
  0x65   : > { %v1249_v25 = vld [vmem:[%s1600_s28 + $0x74] ss:$8 sps:$4 sm:$0xff]   ;;  %v1278_v26 = vld [vmem:[%s1600_s28 + $0x140] ss:$8 sps:$4 sm:$0xff]   ;;  %v1251_v27 = vld [vmem:[%s1600_s28 + $0x70] ss:$8 sps:$4 sm:$0xff]  }
  0x66   : > { %675 = vmatpush1.bf16.msra.mxu1 %v1260_v14  ;;  %v1282_v28 = vld [vmem:[%s1600_s28 + $0x154] ss:$8 sps:$4 sm:$0xff]   ;;  %v1255_v29 = vld [vmem:[%s1600_s28 + $0x84] ss:$8 sps:$4 sm:$0xff]   ;;  %v1284_v30 = vld [vmem:[%s1600_s28 + $0x150] ss:$8 sps:$4 sm:$0xff]  }
  0x67   : > { %636 = vmatpush1.bf16.msra.mxu0 %v1236_v7  ;;  %676 = vmatprep.subr.bf16.mxu1 %v1264_v17  ;;  %v1257_v31 = vld [vmem:[%s1600_s28 + $0x80] ss:$8 sps:$4 sm:$0xff]   ;;  %v1288_v32 = vld [vmem:[%s1600_s28 + $0x164] ss:$8 sps:$4 sm:$0xff]   ;;  %v1261_v33 = vld [vmem:[%s1600_s28 + $0x94] ss:$8 sps:$4 sm:$0xff]  }
  0x68   : > { %637 = vmatprep.subr.bf16.mxu0 %v1237_v8  ;;  %v1290_v36 = vld [vmem:[%s1600_s28 + $0x160] ss:$8 sps:$4 sm:$0xff]   ;;  %v1263_v37 = vld [vmem:[%s1600_s28 + $0x90] ss:$8 sps:$4 sm:$0xff]   ;;  %v1294_v38 = vld [vmem:[%s1600_s28 + $0x174] ss:$8 sps:$4 sm:$0xff]  }
  0x69   : > { %v1267_v39 = vld [vmem:[%s1600_s28 + $0xa4] ss:$8 sps:$4 sm:$0xff]   ;;  %v1296_v40 = vld [vmem:[%s1600_s28 + $0x170] ss:$8 sps:$4 sm:$0xff]   ;;  %v1269_v41 = vld [vmem:[%s1600_s28 + $0xa0] ss:$8 sps:$4 sm:$0xff]  }
  0x6a   : > { %677 = vmatpush1.bf16.msra.mxu1 %v1266_v18  ;;  %v1273_v42 = vld [vmem:[%s1600_s28 + $0xb4] ss:$8 sps:$4 sm:$0xff]   ;;  %v1300_v43 = vld [vmem:[%s1614_s15 + $0x8] ss:$0 sps:$4 sm:$0xff]   ;;  %v1279_v45 = vld [vmem:[%s1600_s28 + $0xc4] ss:$8 sps:$4 sm:$0xff]  }
  0x6b   : > { %638 = vmatpush1.bf16.msra.mxu0 %v1239_v9  ;;  %678 = vmatprep.subr.bf16.mxu1 %v1270_v20  ;;  %v1275_v44 = vld [vmem:[%s1600_s28 + $0xb0] ss:$8 sps:$4 sm:$0xff]   ;;  %v1281_v46 = vld [vmem:[%s1600_s28 + $0xc0] ss:$8 sps:$4 sm:$0xff]   ;;  %v1285_v47 = vld [vmem:[%s1600_s28 + $0xd4] ss:$8 sps:$4 sm:$0xff]  }
  0x6c   : > { %639 = vmatprep.subr.bf16.mxu0 %v1240_v12  ;;  %v1287_v48 = vld [vmem:[%s1600_s28 + $0xd0] ss:$8 sps:$4 sm:$0xff]   ;;  %v1291_v49 = vld [vmem:[%s1600_s28 + $0xe4] ss:$8 sps:$4 sm:$0xff]   ;;  %v1293_v50 = vld [vmem:[%s1600_s28 + $0xe0] ss:$8 sps:$4 sm:$0xff]  }
  0x6d   : > { %v1297_v51 = vld [vmem:[%s1600_s28 + $0xf4] ss:$8 sps:$4 sm:$0xff]   ;;  %v1299_v52 = vld [vmem:[%s1600_s28 + $0xf0] ss:$8 sps:$4 sm:$0xff]   ;;  %p1108_p4 = scmp.ne.s32.totalorder %s1425_s21, 1 }
  0x6e   : > { %679 = vmatpush1.bf16.msra.mxu1 %v1272_v22  ;;  %v328_v58 = vld [vmem:[#allocation2] sm:$0xff]  ;;  %v329_v61 = vld [vmem:[#allocation2 + $0x8] sm:$0xff]  ;;  %v725_v4 = vlaneseq (!%p1108_p4)  ;;  %v1303_v6 = vld [vmem:[#allocation5 + $0x40] sm:$0xff] (!%p1108_p4)  }
  0x6f   : > { %640 = vmatpush1.bf16.msra.mxu0 %v1242_v15  ;;  %680 = vmatprep.subr.bf16.mxu1 %v1276_v24  ;;  %v723_v5 = vld [vmem:[%s1700_s2] sm:$0x3] (!%p1108_p4)  ;;  %v1304_v8 = vld [vmem:[#allocation5] sm:$0xff] (!%p1108_p4)   ;;  %v1305_v11 = vld [vmem:[#allocation5 + $0x48] sm:$0xff] (!%p1108_p4)  }
  0x70   : > { %641 = vmatprep.subr.bf16.mxu0 %v1243_v16  ;;  %v726_v7 = vshrl.u32 (!%p1108_p4), %v725_v4, 7  ;;  %v1306_v14 = vld [vmem:[#allocation5 + $0x8] sm:$0xff] (!%p1108_p4)   ;;  %v1307_v17 = vld [vmem:[#allocation5 + $0x50] sm:$0xff] (!%p1108_p4)  }
  0x71   : > { %v1308_v18 = vld [vmem:[#allocation5 + $0x10] sm:$0xff] (!%p1108_p4)  }
  0x72   : > { %681 = vmatpush1.bf16.msra.mxu1 %v1278_v26  ;;  %v727_v12 = vsub.s32 (!%p1108_p4), 0, %v726_v7  ;;  %v731_v13 = vsub.s32 (!%p1108_p4), 1, %v726_v7  ;;  %v1311_v26 = vld [vmem:[#allocation5 + $0x60] sm:$0xff] (!%p1108_p4)  }
  0x73   : > { %642 = vmatpush1.bf16.msra.mxu0 %v1245_v19  ;;  %682 = vmatprep.subr.bf16.mxu1 %v1282_v28  ;;  %v1313_v28 = vld [vmem:[#allocation5 + $0x68] sm:$0xff] (!%p1108_p4)  }
  0x74   : > { %643 = vmatprep.subr.bf16.mxu0 %v1246_v21  ;;  %v728_v15 = vrot.slane (!%p1108_p4), %v723_v5, %v727_v12  ;;  %v732_v16 = vrot.slane (!%p1108_p4), %v723_v5, %v731_v13  ;;  %v1309_v21 = vld [vmem:[#allocation5 + $0x58] sm:$0xff] (!%p1108_p4)  }
  0x76   : > { %683 = vmatpush1.bf16.msra.mxu1 %v1284_v30  ;;  %v1315_v30 = vld [vmem:[#allocation5 + $0x70] sm:$0xff] (!%p1108_p4)  }
  0x77   : > { %644 = vmatpush1.bf16.msra.mxu0 %v1248_v23  ;;  %684 = vmatprep.subr.bf16.mxu1 %v1288_v32  ;;  %v1317_v32 = vld [vmem:[#allocation5 + $0x78] sm:$0xff] (!%p1108_p4)  }
  0x78   : > { %645 = vmatprep.subr.bf16.mxu0 %v1249_v25  ;;  %v1310_v25 = vld [vmem:[#allocation5 + $0x18] sm:$0xff] (!%p1108_p4)  }
  0x7a   : > { %685 = vmatpush1.bf16.msra.mxu1 %v1290_v36 }
  0x7b   : > { %646 = vmatpush1.bf16.msra.mxu0 %v1251_v27  ;;  %686 = vmatprep.subr.bf16.mxu1 %v1294_v38  ;;  %v1312_v27 = vld [vmem:[#allocation5 + $0x20] sm:$0xff] (!%p1108_p4)  }
  0x7c   : > { %647 = vmatprep.subr.bf16.mxu0 %v1255_v29  ;;  %v1314_v29 = vld [vmem:[#allocation5 + $0x28] sm:$0xff] (!%p1108_p4)  }
  0x7e   : > { %687 = vmatpush1.bf16.msra.mxu1 %v1296_v40 }
  0x7f   : > { %648 = vmatpush1.bf16.msra.mxu0 %v1257_v31  ;;  %v1316_v31 = vld [vmem:[#allocation5 + $0x30] sm:$0xff] (!%p1108_p4)  }
  0x80   : > { %649 = vmatprep.subr.bf16.mxu0 %v1261_v33  ;;  %v1318_v33 = vld [vmem:[#allocation5 + $0x38] sm:$0xff] (!%p1108_p4)  }
  0x81   : > { %705 = vmatmul.mubr.bf16.vlgmr.msra.gmra.mrb[0].mxu1 %v1300_v43 }
  0x83   : > { %650 = vmatpush1.bf16.msra.mxu0 %v1263_v37 }
  0x84   : > { %651 = vmatprep.subr.bf16.mxu0 %v1267_v39 }
  0x87   : > { %652 = vmatpush1.bf16.msra.mxu0 %v1269_v41 }
  0x88   : > { %653 = vmatprep.subr.bf16.mxu0 %v1273_v42 }
  0x8b   : > { %654 = vmatpush1.bf16.msra.mxu0 %v1275_v44 }
  0x8c   : > { %655 = vmatprep.subr.bf16.mxu0 %v1279_v45 }
  0x8f   : > { %656 = vmatpush1.bf16.msra.mxu0 %v1281_v46 }
  0x90   : > { %657 = vmatprep.subr.bf16.mxu0 %v1285_v47 }
  0x93   : > { %658 = vmatpush1.bf16.msra.mxu0 %v1287_v48 }
  0x94   : > { %659 = vmatprep.subr.bf16.mxu0 %v1291_v49 }
  0x97   : > { %660 = vmatpush1.bf16.msra.mxu0 %v1293_v50 }
  0x98   : > { %661 = vmatprep.subr.bf16.mxu0 %v1297_v51 }
  0x9b   : > { %662 = vmatpush1.bf16.msra.mxu0 %v1299_v52 }
  0x9c   : > { %1132 = vmatprep.subr.bf16.mxu0 (!%p1108_p4), %v1303_v6 }
  0x9e   : > { %664 = vmatmul.mubr.bf16.vlgmr.msra.gmra.mrb[0].mxu0 %v1057_v53 }
  0x9f   : > { %1133 = vmatpush3.bf16.msra.mxu0 (!%p1108_p4), %v1304_v8 }
  0xa0   : > { %1134 = vmatprep.subr.bf16.mxu0 (!%p1108_p4), %v1305_v11 }
  0xa3   : > { %1135 = vmatpush3.bf16.msra.mxu0 (!%p1108_p4), %v1306_v14 }
  0xa4   : > { %1136 = vmatprep.subr.bf16.mxu0 (!%p1108_p4), %v1307_v17 }
  0xa7   : > { %1137 = vmatpush3.bf16.msra.mxu0 (!%p1108_p4), %v1308_v18 }
  0xa8   : > { %1138 = vmatprep.subr.bf16.mxu0 (!%p1108_p4), %v1309_v21 }
  0xab   : > { %1139 = vmatpush3.bf16.msra.mxu0 (!%p1108_p4), %v1310_v25 }
  0xac   : > { %1140 = vmatprep.subr.bf16.mxu0 (!%p1108_p4), %v1311_v26 }
  0xaf   : > { %1141 = vmatpush3.bf16.msra.mxu0 (!%p1108_p4), %v1312_v27 }
  0xb0   : > { %1142 = vmatprep.subr.bf16.mxu0 (!%p1108_p4), %v1313_v28 }
  0xb3   : > { %1143 = vmatpush3.bf16.msra.mxu0 (!%p1108_p4), %v1314_v29 }
  0xb4   : > { %1144 = vmatprep.subr.bf16.mxu0 (!%p1108_p4), %v1315_v30 }
  0xb7   : > { %1145 = vmatpush3.bf16.msra.mxu0 (!%p1108_p4), %v1316_v31 }
  0xb8   : > { %1146 = vmatprep.subr.bf16.mxu0 (!%p1108_p4), %v1317_v32 }
  0xbb   : > { %1147 = vmatpush3.bf16.msra.mxu0 (!%p1108_p4), %v1318_v33 }
 0x154   : > { %v706_v54 = vpop.f32.mrb[0].mxu1 }
 0x155   : > { %v708_v55 = vpop.f32.mrb[1].mxu1 }
 0x156   : > { %v710_v56 = vpop.f32.mrb[2].mxu1 }
 0x157   : > { %v711_v57 = vpop.f32.mrb[3].mxu1 }
 0x171   : > { %v665_v59 = vpop.f32.mrb[0].mxu0  ;;  %720 = sbr.rel (%p1108_p4) target bundleno = 765 (0x2fd), region = 52 }
 0x172   : > { %v707_v60 = vadd.f32 %v706_v54, %v665_v59  ;;  %v667_v62 = vpop.f32.mrb[1].mxu0 }
 0x173   : > { %v709_v63 = vadd.f32 %v708_v55, %v667_v62  ;;  %v669_v0 = vpop.f32.mrb[2].mxu0 }
 0x174   : > { %v713_v1 = vadd.f32 %v707_v60, %v328_v58  ;;  %v670_v2 = vpop.f32.mrb[3].mxu0 }
 0x175   : > { %v714_v3 = vadd.f32 %v709_v63, %v329_v61 }
 0x176   : > { %715 = vst [vmem:[#allocation2] sm:$0xff] %v713_v1 }
 0x177   : > { %716 = vst [vmem:[#allocation2 + $0x8] sm:$0xff] %v714_v3 }
 0x17d   : > { %v721_v9 = vld [vmem:[#allocation2] sm:$0xff] }
 0x17e   : > { %v722_v10 = vld [vmem:[#allocation2 + $0x8] sm:$0xff]  ;;  %v735_v19 = vadd.f32 %v728_v15, %v721_v9 }
 0x17f   : > { %v736_v20 = vadd.f32 %v732_v16, %v722_v10 }
 0x180   : > { %v737_v22 = vmul.f32 %v735_v19, %v735_v19 }
 0x181   : > { %v738_v23 = vmul.f32 %v736_v20, %v736_v20 }
 0x183   : > { %v739_v24 = vadd.f32 %v738_v23, %v737_v22 }
 0x185   : > { %740 = vadd.xlane.f32.xlu0 %v739_v24 }
 0x212   : > { %v741_v34 = vpop.xlane.xlu0 %740 }
 0x213   : > { %v742_v35 = vadd.f32 1e-12, %v741_v34 }
 0x215   : > { %1319 = vrsqrt.f32 %v742_v35 }
 0x21f   : > { %v1320_v36 = vpop.eup %1319 }
 0x220   : > { %v745_v37 = vmul.f32 %v1320_v36, %v736_v20  ;;  %v744_v38 = vmul.f32 %v1320_v36, %v735_v19 }
 0x222   : > { %747 = vst [vmem:[%s1703_s5 + $0x8] sm:$0xff] %v745_v37  ;;  %v749_v39 = vpack.c.bf16 %v745_v37, %v745_v37  ;;  %746 = vst [vmem:[%s1703_s5] sm:$0xff] %v744_v38  ;;  %v748_v40 = vpack.c.bf16 %v744_v38, %v744_v38 }
 0x224   : > { %910 = vmatprep.mubr.bf16.mxu0 %v749_v39 }
 0x225   : > { %911 = vmatmul.mubr.bf16.vlgmr.msra.gmra.mrb[0].mxu0 %v748_v40 }
 0x2f8   : > { %v1148_v41 = vpop.f32.mrb[0].mxu0 }
 0x2f9   : > { %v1149_v42 = vpop.f32.mrb[1].mxu0 }
 0x2fa   : > { %v1150_v43 = vadd.f32 %v1149_v42, %v1148_v41  ;;  %v1151_v44 = vpop.f32.mrb[2].mxu0 }
 0x2fb   : > { %v1152_v45 = vpop.f32.mrb[3].mxu0 }
 0x2fc   : > { %918 = vst [vmem:[%s1702_s4] sm:$0xff] %v1150_v43 }
 0x2fd PF: > { %s20_s23 = sadd.s32 1, %s1433_s23   ;;  %s1716_s18 = smov %s1417_s19 }
 0x2fe   : > { %p17_p5 = scmp.ge.s32.totalorder %s20_s23, 4   ;;  %s1717_s19 = smov %s1421_s20 }
 0x2ff   : > { %s1718_s20 = smov %s1559_s29  ;;  %s1719_s21 = smov %s1429_s22 }
 0x300   : > { %s1720_s22 = smov %s1722_s6  ;;  %19 = sbr.rel (!%p17_p5) target bundleno = 5 (0x5), region = 103 }
 0x307   :  { %954 = vsyncpa [#allocation4], 1 }
 0x308   :  { %956 = vsyncpa [#allocation4 + $0x1], 1 }
 0x309   :  { %957 = vsyncpa [#allocation6], 1 }

</bundles_post_ra>
